<compile_context>
chip_gen: v7x
topology: tpu7x:2x2x1
jax: 0.10.0
libtpu: 0.0.40
codegen_flags: <defaults>
</compile_context>

<pallas_src>
import functools
import math

import jax
import jax.numpy as jnp
from jax.experimental import pallas as pl
from jax.experimental.pallas import tpu as pltpu


def _round_up(v, m):
    return (v + m - 1) // m * m


def _pad_to(a, shape):
    return jnp.pad(a, [(0, t - s) for s, t in zip(a.shape, shape)])


def _decoder_gru_kernel(hp,
                        x_ref, we_ref, be_ref,
                        wih_ref, whh_ref, bih_ref, bhh_ref, h0_ref,
                        wo_ref, bo_ref,
                        out_ref, hout_ref,
                        h_scratch):
    """One grid step == one GRU layer; layer weights are streamed per step."""
    layer = pl.program_id(0)
    n_layers = pl.num_programs(0)

    # First layer: run the embed Linear and stash it in the carried scratch.
    @pl.when(layer == 0)
    def _():
        h_scratch[...] = (
            jnp.dot(x_ref[...], we_ref[...],
                    preferred_element_type=jnp.float32) + be_ref[...])

    # Recurrent-path matmul first: gh depends only on this layer's own inputs
    # (h0[layer], W_hh[layer]), not on the carried hidden state, so it sits
    # off the serial dependency chain.
    h_prev = h0_ref[0]                                                # (Bp, Hp) f32
    gh = jnp.dot(h_prev.astype(jnp.bfloat16), whh_ref[0],
                 preferred_element_type=jnp.float32) + bhh_ref[0]     # (Bp, 3Hp)

    h_in = h_scratch[...]                                             # (Bp, Hp) f32
    gi = jnp.dot(h_in.astype(jnp.bfloat16), wih_ref[0],
                 preferred_element_type=jnp.float32) + bih_ref[0]     # (Bp, 3Hp)

    # Gate order [r | z | n]; hp is a multiple of 128 so slices are lane-aligned.
    i_r, i_z, i_n = gi[:, 0:hp], gi[:, hp:2 * hp], gi[:, 2 * hp:3 * hp]
    h_r, h_z, h_n = gh[:, 0:hp], gh[:, hp:2 * hp], gh[:, 2 * hp:3 * hp]

    r = jax.nn.sigmoid(i_r + h_r)
    z = jax.nn.sigmoid(i_z + h_z)
    n = jnp.tanh(i_n + r * h_n)
    h_new = n + z * (h_prev - n)          # == (1 - z) * n + z * h_prev
    h_scratch[...] = h_new

    # Last layer: run the output Linear and emit both (lane-dense) results.
    @pl.when(layer == n_layers - 1)
    def _():
        out_ref[...] = (
            jnp.dot(h_new.astype(jnp.bfloat16), wo_ref[...],
                    preferred_element_type=jnp.float32) + bo_ref[...]
        ).astype(out_ref.dtype)
        hout_ref[...] = h_new.astype(hout_ref.dtype)


def decoder_gru_forward(x, params, *, n_layers, hidden_size):
    """x: (B, input_size) float32. Returns (output, h_final) as float32."""
    (w_embed, b_embed, w_ih, w_hh, b_ih, b_hh, h0, w_out, b_out) = params
    B, input_size = x.shape
    H = hidden_size
    output_size = w_out.shape[1]

    # ---- pad to TPU-friendly shapes & quantize weights to bf16 ------------
    Bp = _round_up(B, 8)              # sublane alignment
    Ip = _round_up(input_size, 128)   # lane alignment
    Hp = _round_up(H, 128)
    Op = _round_up(output_size, 128)

    bf16 = jnp.bfloat16

    x_p = _pad_to(x, (Bp, Ip)).astype(bf16)
    we_p = _pad_to(w_embed, (Ip, Hp)).astype(bf16)
    be_p = _pad_to(b_embed, (1, Hp)).astype(jnp.float32)

    def pad_gates_w(w):   # (L, H, 3H) -> (L, Hp, 3Hp); pad each gate block
        w4 = w.reshape(n_layers, H, 3, H)
        w4 = _pad_to(w4, (n_layers, Hp, 3, Hp))
        return w4.reshape(n_layers, Hp, 3 * Hp).astype(bf16)

    def pad_gates_b(b):   # (L, 1, 3H) -> (L, 1, 3Hp)
        b4 = b.reshape(n_layers, 1, 3, H)
        b4 = _pad_to(b4, (n_layers, 1, 3, Hp))
        return b4.reshape(n_layers, 1, 3 * Hp).astype(jnp.float32)

    wih_p = pad_gates_w(w_ih)
    whh_p = pad_gates_w(w_hh)
    bih_p = pad_gates_b(b_ih)
    bhh_p = pad_gates_b(b_hh)

    h0_p = _pad_to(h0, (n_layers, Bp, Hp)).astype(jnp.float32)
    wo_p = _pad_to(w_out, (Hp, Op)).astype(bf16)
    bo_p = _pad_to(b_out, (1, Op)).astype(jnp.float32)

    # ---- explicit VMEM budget (x2 double-buffering + margin) --------------
    def nbytes(a):
        return math.prod(a.shape) * a.dtype.itemsize

    per_layer = (nbytes(wih_p) + nbytes(whh_p) + nbytes(bih_p)
                 + nbytes(bhh_p) + nbytes(h0_p)) // n_layers
    resident = (nbytes(x_p) + nbytes(we_p) + nbytes(be_p)
                + nbytes(wo_p) + nbytes(bo_p)
                + Bp * Op * 4 + 2 * Bp * Hp * 4)
    vmem_limit = min(max(2 * (2 * per_layer + resident) + (4 << 20), 8 << 20),
                     64 << 20)

    kernel = functools.partial(_decoder_gru_kernel, Hp)

    grid_spec = pltpu.PrefetchScalarGridSpec(
        num_scalar_prefetch=0,
        grid=(n_layers,),
        in_specs=[
            pl.BlockSpec((Bp, Ip), lambda l: (0, 0)),             # x
            pl.BlockSpec((Ip, Hp), lambda l: (0, 0)),             # w_embed
            pl.BlockSpec((1, Hp), lambda l: (0, 0)),              # b_embed
            pl.BlockSpec((1, Hp, 3 * Hp), lambda l: (l, 0, 0)),   # w_ih (stream)
            pl.BlockSpec((1, Hp, 3 * Hp), lambda l: (l, 0, 0)),   # w_hh (stream)
            pl.BlockSpec((1, 1, 3 * Hp), lambda l: (l, 0, 0)),    # b_ih
            pl.BlockSpec((1, 1, 3 * Hp), lambda l: (l, 0, 0)),    # b_hh
            pl.BlockSpec((1, Bp, Hp), lambda l: (l, 0, 0)),       # h0
            pl.BlockSpec((Hp, Op), lambda l: (0, 0)),             # w_out
            pl.BlockSpec((1, Op), lambda l: (0, 0)),              # b_out
        ],
        out_specs=(
            pl.BlockSpec((Bp, Op), lambda l: (0, 0)),             # output
            pl.BlockSpec((Bp, Hp), lambda l: (0, 0)),             # h_final
        ),
        scratch_shapes=[pltpu.VMEM((Bp, Hp), jnp.float32)],       # carried h_in
    )

    out_p, h_p = pl.pallas_call(
        kernel,
        out_shape=(
            jax.ShapeDtypeStruct((Bp, Op), jnp.float32),
            jax.ShapeDtypeStruct((Bp, Hp), jnp.float32),
        ),
        grid_spec=grid_spec,
        compiler_params=pltpu.CompilerParams(
            dimension_semantics=("arbitrary",),   # layer axis is sequential
            vmem_limit_bytes=int(vmem_limit),
        ),
    )(x_p, we_p, be_p, wih_p, whh_p, bih_p, bhh_p, h0_p, wo_p, bo_p)

    return out_p[:B, :output_size], h_p[:B, :H]


def init_params(key, *, input_size, hidden_size, output_size, n_layers, batch_size):
    """Deterministic synthetic parameters (shapes match the PyTorch module)."""
    ks = jax.random.split(key, 8)
    scale = 0.1
    H = hidden_size

    # nn.Linear(input_size, hidden_size): weight (H, in) -> store transposed (in, H)
    w_embed = scale * jax.random.normal(ks[0], (input_size, H), jnp.float32)
    b_embed = scale * jax.random.normal(ks[1], (1, H), jnp.float32)

    # n_layers GRUCell(H, H): weight_ih (3H, H) -> (H, 3H); weight_hh (3H, H) -> (H, 3H)
    w_ih = scale * jax.random.normal(ks[2], (n_layers, H, 3 * H), jnp.float32)
    w_hh = scale * jax.random.normal(ks[3], (n_layers, H, 3 * H), jnp.float32)
    b_ih = scale * jax.random.normal(ks[4], (n_layers, 1, 3 * H), jnp.float32)
    b_hh = scale * jax.random.normal(ks[5], (n_layers, 1, 3 * H), jnp.float32)

    # init_hidden(): zeros (batch, H) per layer
    h0 = jnp.zeros((n_layers, batch_size, H), jnp.float32)

    # nn.Linear(hidden_size, output_size): weight (out, H) -> store (H, out)
    w_out = scale * jax.random.normal(ks[6], (H, output_size), jnp.float32)
    b_out = scale * jax.random.normal(ks[7], (1, output_size), jnp.float32)

    return (w_embed, b_embed, w_ih, w_hh, b_ih, b_hh, h0, w_out, b_out)


def reference_forward(x, params, *, n_layers, hidden_size):
    """Plain-JAX reference with the same bf16 weight/activation quantization
    and f32 accumulation as the kernel (PyTorch GRUCell gate order r,z,n)."""
    (w_embed, b_embed, w_ih, w_hh, b_ih, b_hh, h0, w_out, b_out) = params
    H = hidden_size
    bf = lambda a: a.astype(jnp.bfloat16)

    h_in = jnp.dot(bf(x), bf(w_embed), preferred_element_type=jnp.float32) + b_embed
    for i in range(n_layers):
        gi = jnp.dot(bf(h_in), bf(w_ih[i]),
                     preferred_element_type=jnp.float32) + b_ih[i]
        gh = jnp.dot(bf(h0[i]), bf(w_hh[i]),
                     preferred_element_type=jnp.float32) + b_hh[i]
        r = jax.nn.sigmoid(gi[:, :H] + gh[:, :H])
        z = jax.nn.sigmoid(gi[:, H:2 * H] + gh[:, H:2 * H])
        n = jnp.tanh(gi[:, 2 * H:] + r * gh[:, 2 * H:])
        h_in = n + z * (h0[i] - n)
    out = jnp.dot(bf(h_in), bf(w_out), preferred_element_type=jnp.float32) + b_out
    return out, h_in


if __name__ == "__main__":
    batch_size = 2
    input_size = 16
    hidden_size = 32
    output_size = 24
    n_layers = 2

    key = jax.random.PRNGKey(0)
    k_x, k_p = jax.random.split(key)

    # forward does inputs.view(-1, input_size); supply (B, input_size) directly.
    x = jax.random.normal(k_x, (batch_size, input_size), jnp.float32)
    params = init_params(k_p, input_size=input_size, hidden_size=hidden_size,
                         output_size=output_size, n_layers=n_layers,
                         batch_size=batch_size)

    out, h_final = decoder_gru_forward(x, params,
                                       n_layers=n_layers, hidden_size=hidden_size)
    out = jax.block_until_ready(out)
    h_final = jax.block_until_ready(h_final)

    ref_out, ref_h = reference_forward(x, params,
                                       n_layers=n_layers, hidden_size=hidden_size)
    assert out.shape == (batch_size, output_size)
    assert h_final.shape == (batch_size, hidden_size)
    assert jnp.allclose(out, ref_out, atol=2e-3, rtol=2e-3)
    assert jnp.allclose(h_final, ref_h, atol=2e-3, rtol=2e-3)

    print("KERNEL_OK")
</pallas_src>

<mosaic_0001>
module attributes {stable_mosaic.version = 11 : i64} {
  func.func @_decoder_gru_kernel(%arg0: i32, %arg1: memref<8x128xbf16, #tpu.memory_space<vmem>>, %arg2: memref<128x128xbf16, #tpu.memory_space<vmem>>, %arg3: memref<1x128xf32, #tpu.memory_space<vmem>>, %arg4: memref<1x128x384xbf16, #tpu.memory_space<vmem>>, %arg5: memref<1x128x384xbf16, #tpu.memory_space<vmem>>, %arg6: memref<1x1x384xf32, #tpu.memory_space<vmem>>, %arg7: memref<1x1x384xf32, #tpu.memory_space<vmem>>, %arg8: memref<1x8x128xf32, #tpu.memory_space<vmem>>, %arg9: memref<128x128xbf16, #tpu.memory_space<vmem>>, %arg10: memref<1x128xf32, #tpu.memory_space<vmem>>, %arg11: memref<8x128xf32, #tpu.memory_space<vmem>>, %arg12: memref<8x128xf32, #tpu.memory_space<vmem>>, %arg13: memref<8x128xf32, #tpu.memory_space<vmem>>) attributes {dimension_semantics = [#tpu.dimension_semantics<arbitrary>], iteration_bounds = array<i64: 2>, scalar_prefetch = 0 : i64, scratch_operands = 1 : i64, tpu.core_type = #tpu.core_type<tc>, window_params = [{pipeline_mode = #tpu.pipeline_mode<synchronous>, transform_indices = @transform_0, window_bounds = array<i64: 8, 128>}, {pipeline_mode = #tpu.pipeline_mode<synchronous>, transform_indices = @transform_1, window_bounds = array<i64: 128, 128>}, {pipeline_mode = #tpu.pipeline_mode<synchronous>, transform_indices = @transform_2, window_bounds = array<i64: 1, 128>}, {transform_indices = @transform_3, window_bounds = array<i64: 1, 128, 384>}, {transform_indices = @transform_4, window_bounds = array<i64: 1, 128, 384>}, {transform_indices = @transform_5, window_bounds = array<i64: 1, 1, 384>}, {transform_indices = @transform_6, window_bounds = array<i64: 1, 1, 384>}, {transform_indices = @transform_7, window_bounds = array<i64: 1, 8, 128>}, {pipeline_mode = #tpu.pipeline_mode<synchronous>, transform_indices = @transform_8, window_bounds = array<i64: 128, 128>}, {pipeline_mode = #tpu.pipeline_mode<synchronous>, transform_indices = @transform_9, window_bounds = array<i64: 1, 128>}, {pipeline_mode = #tpu.pipeline_mode<synchronous>, transform_indices = @transform_10, window_bounds = array<i64: 8, 128>}, {pipeline_mode = #tpu.pipeline_mode<synchronous>, transform_indices = @transform_11, window_bounds = array<i64: 8, 128>}]} {
    %c0_i32 = arith.constant 0 : i32
    %0 = arith.cmpi eq, %arg0, %c0_i32 : i32
    %1 = arith.extui %0 : i1 to i32
    %c0_i32_0 = arith.constant 0 : i32
    %2 = arith.cmpi ne, %1, %c0_i32_0 : i32
    scf.if %2 {
      %c0_23 = arith.constant 0 : index
      %c0_24 = arith.constant 0 : index
      %50 = vector.load %arg1[%c0_23, %c0_24] : memref<8x128xbf16, #tpu.memory_space<vmem>>, vector<8x128xbf16>
      %c0_25 = arith.constant 0 : index
      %c0_26 = arith.constant 0 : index
      %51 = vector.load %arg2[%c0_25, %c0_26] : memref<128x128xbf16, #tpu.memory_space<vmem>>, vector<128x128xbf16>
      %cst_27 = arith.constant dense<0.000000e+00> : vector<8x128xf32>
      %52 = tpu.matmul %50, %51, %cst_27 {dimension_numbers = #tpu.dot_dimension_numbers<[1], [0], [0], [1], [0, 0, 1, 1], [], []>} : vector<8x128xbf16>, vector<128x128xbf16>, vector<8x128xf32> -> vector<8x128xf32>
      %c0_28 = arith.constant 0 : index
      %c0_29 = arith.constant 0 : index
      %53 = vector.load %arg3[%c0_28, %c0_29] : memref<1x128xf32, #tpu.memory_space<vmem>>, vector<1x128xf32>
      %54 = vector.broadcast %53 : vector<1x128xf32> to vector<8x128xf32>
      %55 = arith.addf %52, %54 : vector<8x128xf32>
      %c0_30 = arith.constant 0 : index
      %c0_31 = arith.constant 0 : index
      %56 = vector.load %arg13[%c0_30, %c0_31] : memref<8x128xf32, #tpu.memory_space<vmem>>, vector<8x128xf32>
      tpu.vector_store %arg13[%c0_30, %c0_31], %55 {strides = array<i32>} : memref<8x128xf32, #tpu.memory_space<vmem>>, vector<8x128xf32>,
    } else {
    }
    %c0 = arith.constant 0 : index
    %c0_1 = arith.constant 0 : index
    %c0_2 = arith.constant 0 : index
    %3 = vector.load %arg8[%c0, %c0_1, %c0_2] : memref<1x8x128xf32, #tpu.memory_space<vmem>>, vector<1x8x128xf32>
    %4 = vector.shape_cast %3 : vector<1x8x128xf32> to vector<8x128xf32>
    %5 = arith.truncf %4 : vector<8x128xf32> to vector<8x128xbf16>
    %c0_3 = arith.constant 0 : index
    %c0_4 = arith.constant 0 : index
    %c0_5 = arith.constant 0 : index
    %6 = vector.load %arg5[%c0_3, %c0_4, %c0_5] : memref<1x128x384xbf16, #tpu.memory_space<vmem>>, vector<1x128x384xbf16>
    %7 = vector.shape_cast %6 : vector<1x128x384xbf16> to vector<128x384xbf16>
    %cst = arith.constant dense<0.000000e+00> : vector<8x384xf32>
    %8 = tpu.matmul %5, %7, %cst {dimension_numbers = #tpu.dot_dimension_numbers<[1], [0], [0], [1], [0, 0, 1, 1], [], []>} : vector<8x128xbf16>, vector<128x384xbf16>, vector<8x384xf32> -> vector<8x384xf32>
    %c0_6 = arith.constant 0 : index
    %c0_7 = arith.constant 0 : index
    %c0_8 = arith.constant 0 : index
    %9 = vector.load %arg7[%c0_6, %c0_7, %c0_8] : memref<1x1x384xf32, #tpu.memory_space<vmem>>, vector<1x1x384xf32>
    %10 = vector.shape_cast %9 : vector<1x1x384xf32> to vector<1x384xf32>
    %11 = vector.broadcast %10 : vector<1x384xf32> to vector<8x384xf32>
    %12 = arith.addf %8, %11 : vector<8x384xf32>
    %c0_9 = arith.constant 0 : index
    %c0_10 = arith.constant 0 : index
    %13 = vector.load %arg13[%c0_9, %c0_10] : memref<8x128xf32, #tpu.memory_space<vmem>>, vector<8x128xf32>
    %14 = arith.truncf %13 : vector<8x128xf32> to vector<8x128xbf16>
    %c0_11 = arith.constant 0 : index
    %c0_12 = arith.constant 0 : index
    %c0_13 = arith.constant 0 : index
    %15 = vector.load %arg4[%c0_11, %c0_12, %c0_13] : memref<1x128x384xbf16, #tpu.memory_space<vmem>>, vector<1x128x384xbf16>
    %16 = vector.shape_cast %15 : vector<1x128x384xbf16> to vector<128x384xbf16>
    %cst_14 = arith.constant dense<0.000000e+00> : vector<8x384xf32>
    %17 = tpu.matmul %14, %16, %cst_14 {dimension_numbers = #tpu.dot_dimension_numbers<[1], [0], [0], [1], [0, 0, 1, 1], [], []>} : vector<8x128xbf16>, vector<128x384xbf16>, vector<8x384xf32> -> vector<8x384xf32>
    %c0_15 = arith.constant 0 : index
    %c0_16 = arith.constant 0 : index
    %c0_17 = arith.constant 0 : index
    %18 = vector.load %arg6[%c0_15, %c0_16, %c0_17] : memref<1x1x384xf32, #tpu.memory_space<vmem>>, vector<1x1x384xf32>
    %19 = vector.shape_cast %18 : vector<1x1x384xf32> to vector<1x384xf32>
    %20 = vector.broadcast %19 : vector<1x384xf32> to vector<8x384xf32>
    %21 = arith.addf %17, %20 : vector<8x384xf32>
    %22 = vector.extract_strided_slice %21 {offsets = [0, 0], sizes = [8, 128], strides = [1, 1]} : vector<8x384xf32> to vector<8x128xf32>
    %23 = vector.extract_strided_slice %21 {offsets = [0, 128], sizes = [8, 128], strides = [1, 1]} : vector<8x384xf32> to vector<8x128xf32>
    %24 = vector.extract_strided_slice %21 {offsets = [0, 256], sizes = [8, 128], strides = [1, 1]} : vector<8x384xf32> to vector<8x128xf32>
    %25 = vector.extract_strided_slice %12 {offsets = [0, 0], sizes = [8, 128], strides = [1, 1]} : vector<8x384xf32> to vector<8x128xf32>
    %26 = vector.extract_strided_slice %12 {offsets = [0, 128], sizes = [8, 128], strides = [1, 1]} : vector<8x384xf32> to vector<8x128xf32>
    %27 = vector.extract_strided_slice %12 {offsets = [0, 256], sizes = [8, 128], strides = [1, 1]} : vector<8x384xf32> to vector<8x128xf32>
    %28 = arith.addf %22, %25 : vector<8x128xf32>
    %29 = arith.negf %28 : vector<8x128xf32>
    %30 = math.exp %29 : vector<8x128xf32>
    %cst_18 = arith.constant 1.000000e+00 : f32
    %31 = vector.broadcast %cst_18 : f32 to vector<8x128xf32>
    %32 = arith.addf %31, %30 : vector<8x128xf32>
    %33 = arith.divf %31, %32 : vector<8x128xf32>
    %34 = arith.addf %23, %26 : vector<8x128xf32>
    %35 = arith.negf %34 : vector<8x128xf32>
    %36 = math.exp %35 : vector<8x128xf32>
    %cst_19 = arith.constant 1.000000e+00 : f32
    %37 = vector.broadcast %cst_19 : f32 to vector<8x128xf32>
    %38 = arith.addf %37, %36 : vector<8x128xf32>
    %39 = arith.divf %37, %38 : vector<8x128xf32>
    %40 = arith.mulf %33, %27 : vector<8x128xf32>
    %41 = arith.addf %24, %40 : vector<8x128xf32>
    %42 = math.tanh %41 : vector<8x128xf32>
    %43 = arith.subf %4, %42 : vector<8x128xf32>
    %44 = arith.mulf %39, %43 : vector<8x128xf32>
    %45 = arith.addf %42, %44 : vector<8x128xf32>
    %c0_20 = arith.constant 0 : index
    %c0_21 = arith.constant 0 : index
    %46 = vector.load %arg13[%c0_20, %c0_21] : memref<8x128xf32, #tpu.memory_space<vmem>>, vector<8x128xf32>
    tpu.vector_store %arg13[%c0_20, %c0_21], %45 {strides = array<i32>} : memref<8x128xf32, #tpu.memory_space<vmem>>, vector<8x128xf32>,
    %c1_i32 = arith.constant 1 : i32
    %47 = arith.cmpi eq, %arg0, %c1_i32 : i32
    %48 = arith.extui %47 : i1 to i32
    %c0_i32_22 = arith.constant 0 : i32
    %49 = arith.cmpi ne, %48, %c0_i32_22 : i32
    scf.if %49 {
      %50 = arith.truncf %45 : vector<8x128xf32> to vector<8x128xbf16>
      %c0_23 = arith.constant 0 : index
      %c0_24 = arith.constant 0 : index
      %51 = vector.load %arg9[%c0_23, %c0_24] : memref<128x128xbf16, #tpu.memory_space<vmem>>, vector<128x128xbf16>
      %cst_25 = arith.constant dense<0.000000e+00> : vector<8x128xf32>
      %52 = tpu.matmul %50, %51, %cst_25 {dimension_numbers = #tpu.dot_dimension_numbers<[1], [0], [0], [1], [0, 0, 1, 1], [], []>} : vector<8x128xbf16>, vector<128x128xbf16>, vector<8x128xf32> -> vector<8x128xf32>
      %c0_26 = arith.constant 0 : index
      %c0_27 = arith.constant 0 : index
      %53 = vector.load %arg10[%c0_26, %c0_27] : memref<1x128xf32, #tpu.memory_space<vmem>>, vector<1x128xf32>
      %54 = vector.broadcast %53 : vector<1x128xf32> to vector<8x128xf32>
      %55 = arith.addf %52, %54 : vector<8x128xf32>
      %c0_28 = arith.constant 0 : index
      %c0_29 = arith.constant 0 : index
      %56 = vector.load %arg11[%c0_28, %c0_29] : memref<8x128xf32, #tpu.memory_space<vmem>>, vector<8x128xf32>
      tpu.vector_store %arg11[%c0_28, %c0_29], %55 {strides = array<i32>} : memref<8x128xf32, #tpu.memory_space<vmem>>, vector<8x128xf32>,
      %c0_30 = arith.constant 0 : index
      %c0_31 = arith.constant 0 : index
      %57 = vector.load %arg12[%c0_30, %c0_31] : memref<8x128xf32, #tpu.memory_space<vmem>>, vector<8x128xf32>
      tpu.vector_store %arg12[%c0_30, %c0_31], %45 {strides = array<i32>} : memref<8x128xf32, #tpu.memory_space<vmem>>, vector<8x128xf32>,
    } else {
    }
    return
  }
  func.func @transform_0(%arg0: i32) -> (i32, i32) {
    %c0_i32 = arith.constant 0 : i32
    %c0_i32_0 = arith.constant 0 : i32
    %c0_i32_1 = arith.constant 0 : i32
    return %c0_i32, %c0_i32_0 : i32, i32
  }
  func.func @transform_1(%arg0: i32) -> (i32, i32) {
    %c0_i32 = arith.constant 0 : i32
    %c0_i32_0 = arith.constant 0 : i32
    %c0_i32_1 = arith.constant 0 : i32
    return %c0_i32, %c0_i32_0 : i32, i32
  }
  func.func @transform_2(%arg0: i32) -> (i32, i32) {
    %c0_i32 = arith.constant 0 : i32
    %c0_i32_0 = arith.constant 0 : i32
    %c0_i32_1 = arith.constant 0 : i32
    return %c0_i32, %c0_i32_0 : i32, i32
  }
  func.func @transform_3(%arg0: i32) -> (i32, i32, i32) {
    %c0_i32 = arith.constant 0 : i32
    %c0_i32_0 = arith.constant 0 : i32
    %c0_i32_1 = arith.constant 0 : i32
    return %arg0, %c0_i32, %c0_i32_0 : i32, i32, i32
  }
  func.func @transform_4(%arg0: i32) -> (i32, i32, i32) {
    %c0_i32 = arith.constant 0 : i32
    %c0_i32_0 = arith.constant 0 : i32
    %c0_i32_1 = arith.constant 0 : i32
    return %arg0, %c0_i32, %c0_i32_0 : i32, i32, i32
  }
  func.func @transform_5(%arg0: i32) -> (i32, i32, i32) {
    %c0_i32 = arith.constant 0 : i32
    %c0_i32_0 = arith.constant 0 : i32
    %c0_i32_1 = arith.constant 0 : i32
    return %arg0, %c0_i32, %c0_i32_0 : i32, i32, i32
  }
  func.func @transform_6(%arg0: i32) -> (i32, i32, i32) {
    %c0_i32 = arith.constant 0 : i32
    %c0_i32_0 = arith.constant 0 : i32
    %c0_i32_1 = arith.constant 0 : i32
    return %arg0, %c0_i32, %c0_i32_0 : i32, i32, i32
  }
  func.func @transform_7(%arg0: i32) -> (i32, i32, i32) {
    %c0_i32 = arith.constant 0 : i32
    %c0_i32_0 = arith.constant 0 : i32
    %c0_i32_1 = arith.constant 0 : i32
    return %arg0, %c0_i32, %c0_i32_0 : i32, i32, i32
  }
  func.func @transform_8(%arg0: i32) -> (i32, i32) {
    %c0_i32 = arith.constant 0 : i32
    %c0_i32_0 = arith.constant 0 : i32
    %c0_i32_1 = arith.constant 0 : i32
    return %c0_i32, %c0_i32_0 : i32, i32
  }
  func.func @transform_9(%arg0: i32) -> (i32, i32) {
    %c0_i32 = arith.constant 0 : i32
    %c0_i32_0 = arith.constant 0 : i32
    %c0_i32_1 = arith.constant 0 : i32
    return %c0_i32, %c0_i32_0 : i32, i32
  }
  func.func @transform_10(%arg0: i32) -> (i32, i32) {
    %c0_i32 = arith.constant 0 : i32
    %c0_i32_0 = arith.constant 0 : i32
    %c0_i32_1 = arith.constant 0 : i32
    return %c0_i32, %c0_i32_0 : i32, i32
  }
  func.func @transform_11(%arg0: i32) -> (i32, i32) {
    %c0_i32 = arith.constant 0 : i32
    %c0_i32_0 = arith.constant 0 : i32
    %c0_i32_1 = arith.constant 0 : i32
    return %c0_i32, %c0_i32_0 : i32, i32
  }
}

</mosaic_0001>

<bundles_post_ra>
// kernel: tpu_custom_call.1
= control target key start
LH: loop header
LB: loop body
LE: loop exit
PB: predicated region body
PF: predicated region fallthrough
CT: control target
= control target key end

     0   :  { %s2691_s0 = inlined_call_operand.hbm [shape: bf16[8,128], index: 0, kind: input, shape index: {}]   ;;  %s2692_s1 = inlined_call_operand.hbm [shape: bf16[128,128], index: 1, kind: input, shape index: {}]   ;;  %s2693_s2 = inlined_call_operand.vmem [shape: f32[1,128], index: 2, kind: input, shape index: {}]   ;;  %s2694_s3 = inlined_call_operand.hbm [shape: bf16[2,128,384], index: 3, kind: input, shape index: {}]   ;;  %s2695_s4 = inlined_call_operand.hbm [shape: bf16[2,128,384], index: 4, kind: input, shape index: {}]   ;;  %s2696_s5 = inlined_call_operand.vmem [shape: f32[2,1,384], index: 5, kind: input, shape index: {}]   ;;  %s2697_s6 = inlined_call_operand.hbm [shape: f32[2,1,384], index: 6, kind: input, shape index: {}]   ;;  %s2698_s7 = inlined_call_operand.vmem [shape: f32[2,8,128], index: 7, kind: input, shape index: {}]   ;;  %s2699_s8 = inlined_call_operand.hbm [shape: bf16[128,128], index: 8, kind: input, shape index: {}]   ;;  %s2700_s9 = inlined_call_operand.vmem [shape: f32[1,128], index: 9, kind: input, shape index: {}]   ;;  %s2701_s10 = inlined_call_operand.hbm [shape: f32[8,128], index: 10, kind: output, shape index: {0}]   ;;  %s2702_s11 = inlined_call_operand.hbm [shape: f32[8,128], index: 11, kind: output, shape index: {1}]  }
   0x1   :  { %2721 = sst [smem:[#allocation23_spill]] %s2691_s0 }
   0x2   :  { %2722 = sst [smem:[#allocation24_spill]] %s2692_s1 }
   0x3   :  { %2723 = sst [smem:[#allocation25_spill]] %s2693_s2 }
   0x4   :  { %2724 = sst [smem:[#allocation26_spill]] %s2694_s3 }
   0x5   :  { %2725 = sst [smem:[#allocation27_spill]] %s2695_s4 }
   0x6   :  { %2726 = sst [smem:[#allocation28_spill]] %s2700_s9 }
   0x7   :  { %2727 = sst [smem:[#allocation29_spill]] %s2701_s10 }
   0x8   :  { %2728 = sst [smem:[#allocation30_spill]] %s2702_s11 }
   0x9   :  { %17 = vsyncpa [#allocation4], 0 }
   0xa   :  { %18 = vsyncpa [#allocation7], 0 }
   0xb   :  { %19 = vsyncpa [#allocation5], 0 }
   0xc   :  { %20 = vsyncpa [#allocation14], 0  ;;  %s2264_s17 = smov 0   ;;  %s2266_s18 = smov 0  }
   0xd   :  { %s2268_s19 = smov 0   ;;  %s2270_s20 = smov 0  }
   0xe LB: > { %s2283_s21 = sadd.s32 4294967295, %s2183_s20   ;;  %s2286_s22 = sadd.s32 1, %s2183_s20   ;;  %s2183_s20 = sphi %s2270_s20, %s2766_s20   ;;  %s2179_s19 = sphi %s2268_s19, %s2770_s19   ;;  %s2175_s18 = sphi %s2266_s18, %s2769_s18   ;;  %s2171_s17 = sphi %s2264_s17, %s2768_s17  }
   0xf   : > { %2729 = sst [smem:[#allocation21_spill]] %s2286_s22  ;;  %s93_s23 = ssub.s32 %s2183_s20, %s2286_s22 }
  0x10   : > { %s96_s24 = sadd.s32 1, %s2179_s19  ;;  %p94_p0 = scmp.eq.s32.totalorder %s93_s23, 0 }
  0x11   : > { %p103_p1 = scmp.ne.s32.totalorder %s2179_s19, %s2175_s18  ;;  %p104_p2 = scmp.eq.s32.totalorder %s2183_s20, 0 }
  0x12   : > { %p109_p3 = scmp.ne.s32.totalorder %s2175_s18, %s2171_s17  ;;  %p2706_p5 = scmp.eq.s32.totalorder %s2283_s21, 0 }
  0x13   : > { %s2296_s25 = scalar_select %p94_p0, %s2179_s19, %s96_s24  }
  0x14   : > { %p2298_p4 = por %p104_p2, %p103_p1  ;;  %p1486_p6 = scmp.ge.s32.totalorder %s2183_s20, 1 }
  0x15   : > { %2730 = sst [smem:[#allocation22_spill]] %s2296_s25  ;;  %p308_p7 = scmp.lt.s32.totalorder %s2183_s20, 3 }
  0x16   : > { %p2307_p8 = por %p2706_p5, %p109_p3  ;;  %s2185_s29 = smov [#allocation3]  }
  0x17   : > { %p2312_p10 = pnand %p1486_p6, %p308_p7  ;;  %s321_s30 = sshll.u32 %s2185_s29, 4  ;;  %s322_s30 = int_to_ptr.vmem [resolvable:$true] %s321_s30 }
  0x18   : > { %s2732_s27 = scalar_select %p2307_p8, 1, 0 }
  0x19   : > { %s2733_s28 = scalar_select %p2312_p10, 1, 0 }
  0x1a   : > { %p1734_p11 = pneg %p2312_p10  ;;  %p1757_p12 = scmp.lt.s32.totalorder %s2183_s20, 2 }
  0x1b   : > { %s364_s12 = sand.u32 1, %s2183_s20   ;;  %s2705_s15 = sand.u32 1, %s2179_s19  }
  0x1c   : > { %p2322_p13 = pnand %p1734_p11, %p2706_p5  ;;  %p2328_p0 = pnand %p1757_p12, %p2298_p4 }
  0x1d   : > { %s2335_s16 = smul.u32 192, %s2705_s15  ;;  %s2736_s0 = sld [smem:[#allocation23_spill]] }
  0x1e   : > { %s2734_s13 = scalar_select %p2322_p13, 1, 0 }
  0x1f   : > { %s2735_s14 = scalar_select %p2328_p0, 1, 0 }
  0x20   : > { %p2345_p2 = pneg %p2322_p13 }
  0x22   : > { %s2737_s26 = scalar_select %p2345_p2, 1, 0 }
  0x23   : > { %s1903_s24 = scalar_lea.hbm %s2736_s0, 64 }
  0x24   : > { %p1904_p1 = scmp.ne.s32.totalorder %s2736_s0, %s1903_s24  ;;  %p1910_p6 = scmp.lt.u32.totalorder %s1903_s24, %s2736_s0 }
  0x26   : > { %p1906_p3 = pnand %p2345_p2, %p1904_p1 }
  0x28   : > { %p1907_p4 = pneg %p1906_p3 }
  0x2a   : > { %p1912_p7 = pnand %p1910_p6, %p1907_p4 }
  0x2c   : > { %1915 = shalt.err (!%p1912_p7)
}
  0x2d   : > { %s1916_s17 = scalar_lea.vmem %s322_s30, 64  ;;  %p1924_p5 = scmp.lt.s32.totalorder %s322_s30, %s322_s30 }
  0x2e   : > { %p1917_p11 = scmp.ne.s32.totalorder %s322_s30, %s1916_s17  ;;  %p1925_p8 = scmp.lt.s32.totalorder %s1916_s17, %s1916_s17 }
  0x30   : > { %p1919_p12 = pnand %p1917_p11, %p2345_p2  ;;  %p1926_p10 = por %p1925_p8, %p1924_p5 }
  0x32   : > { %p1920_p9 = pneg %p1919_p12 }
  0x34   : > { %p1927_p0 = pnand %p1926_p10, %p1920_p9 }
  0x36   : > { %1930 = shalt.err (!%p1927_p0)
}
  0x37   : > { %1737 = dma.hbm_to_vmem [thread:$0]  (!%p2322_p13), %s2736_s0, 64, %s322_s30, [#allocation4]  }
  0x38   : > { %s2711_s22 = smul.u32 3072, %s2183_s20  ;;  %s368_s15 = scalar_lea.vmem [#allocation8], %s2335_s16 }
  0x39   : > { %s375_s24 = sshll.u32 %s368_s15, 4  ;;  %s2738_s3 = sld [smem:[#allocation26_spill]]  ;;  %s2363_s24 = int_to_ptr.vmem [resolvable:$true] %s375_s24 }
  0x3a   : > { %s2372_s25 = scalar_lea.sflag [#allocation4], %s364_s12  ;;  %p2739_p8 = scmp.ne.s32.totalorder %s2735_s14, 0 }
  0x3c   : > { %p2378_p9 = pneg %p2739_p8 }
  0x3f   : > { %s2370_s11 = scalar_lea.hbm %s2738_s3, %s2711_s22  ;;  %s1936_s17 = scalar_lea.hbm %s2738_s3, 6144 }
  0x40   : > { %s1931_s23 = scalar_lea.hbm %s2370_s11, 3072  ;;  %p1937_p1 = scmp.lt.u32.totalorder %s2370_s11, %s2738_s3 }
  0x41   : > { %p1932_p5 = scmp.ne.s32.totalorder %s2370_s11, %s1931_s23  ;;  %p1938_p3 = scmp.lt.u32.totalorder %s1936_s17, %s1931_s23 }
  0x42   : > { %p1940_p6 = scmp.lt.u32.totalorder %s1931_s23, %s2370_s11 }
  0x43   : > { %p1934_p10 = pnand %p2378_p9, %p1932_p5  ;;  %p1939_p4 = por %p1938_p3, %p1937_p1 }
  0x45   : > { %p1935_p0 = pneg %p1934_p10  ;;  %p1941_p7 = por %p1940_p6, %p1939_p4 }
  0x47   : > { %p1942_p11 = pnand %p1941_p7, %p1935_p0 }
  0x49   : > { %1945 = shalt.err (!%p1942_p11)
}
  0x4a   : > { %s1946_s12 = scalar_lea.vmem %s2363_s24, 3072  ;;  %s2186_s15 = smov [#allocation8]  }
  0x4b   : > { %p1947_p12 = scmp.ne.s32.totalorder %s2363_s24, %s1946_s12  ;;  %s1951_s29 = sshll.u32 %s2186_s15, 4  ;;  %s1952_s29 = int_to_ptr.vmem [resolvable:$false] %s1951_s29 }
  0x4c   : > { %s1953_s0 = scalar_lea.vmem %s1952_s29, 6144  ;;  %p1954_p13 = scmp.lt.s32.totalorder %s2363_s24, %s1952_s29 }
  0x4d   : > { %p1949_p5 = pnand %p1947_p12, %p2378_p9  ;;  %p1955_p2 = scmp.lt.s32.totalorder %s1953_s0, %s1946_s12 }
  0x4f   : > { %p1950_p10 = pneg %p1949_p5  ;;  %p1956_p1 = por %p1955_p2, %p1954_p13 }
  0x51   : > { %p1957_p3 = pnand %p1956_p1, %p1950_p10 }
  0x53   : > { %1960 = shalt.err (!%p1957_p3)
}
  0x54   : > { %s2718_s22 = smov 192   ;;  %s2188_s23 = smov 12  }
  0x55   : > { %1747 = dma.hbm_to_vmem [thread:$0]  (!%p2739_p8), %s2370_s11, 3072, %s2363_s24, %s2372_s25, %s2718_s22, %s2718_s22, %s2188_s23  }
  0x56   : > { %s2189_s17 = smov [#allocation6]   ;;  %s2741_s1 = sld [smem:[#allocation24_spill]] }
  0x57   : > { %s331_s15 = sshll.u32 %s2189_s17, 4  ;;  %p2742_p2 = scmp.ne.s32.totalorder %s2737_s26, 0  ;;  %s332_s15 = int_to_ptr.vmem [resolvable:$true] %s331_s15 }
  0x5c   : > { %s1961_s0 = scalar_lea.hbm %s2741_s1, 1024 }
  0x5d   : > { %p1962_p13 = scmp.ne.s32.totalorder %s2741_s1, %s1961_s0  ;;  %p1968_p6 = scmp.lt.u32.totalorder %s1961_s0, %s2741_s1 }
  0x5f   : > { %p1964_p0 = pnand %p1962_p13, %p2742_p2 }
  0x61   : > { %p1965_p4 = pneg %p1964_p0 }
  0x63   : > { %p1970_p7 = pnand %p1968_p6, %p1965_p4 }
  0x65   : > { %1973 = shalt.err (!%p1970_p7)
}
  0x66   : > { %s1974_s11 = scalar_lea.vmem %s332_s15, 1024  ;;  %p1982_p10 = scmp.lt.s32.totalorder %s332_s15, %s332_s15 }
  0x67   : > { %p1975_p11 = scmp.ne.s32.totalorder %s332_s15, %s1974_s11  ;;  %p1983_p1 = scmp.lt.s32.totalorder %s1974_s11, %s1974_s11 }
  0x69   : > { %p1977_p12 = pnand %p1975_p11, %p2742_p2  ;;  %p1984_p3 = por %p1983_p1, %p1982_p10 }
  0x6b   : > { %p1978_p5 = pneg %p1977_p12 }
  0x6d   : > { %p1985_p8 = pnand %p1984_p3, %p1978_p5 }
  0x6f   : > { %1988 = shalt.err (!%p1985_p8)
}
  0x70   : > { %s2719_s3 = smov 64   ;;  %s2720_s2 = smov 4  }
  0x71   : > { %p2743_p13 = scmp.ne.s32.totalorder %s2734_s13, 0  ;;  %s2744_s24 = smul.u32 3072, %s2183_s20 }
  0x72   : > { %s2745_s4 = sld [smem:[#allocation27_spill]]  ;;  %s389_s0 = scalar_lea.vmem [#allocation9], %s2335_s16 }
  0x73   : > { %1740 = dma.hbm_to_vmem [thread:$0]  (!%p2743_p13), %s2741_s1, 1024, %s332_s15, [#allocation7], %s2719_s3, %s2719_s3, %s2720_s2  }
  0x74   : > { %s396_s11 = sshll.u32 %s389_s0, 4  ;;  %s2434_s11 = int_to_ptr.vmem [resolvable:$true] %s396_s11 }
  0x78   : > { %s2431_s12 = scalar_lea.hbm %s2745_s4, %s2744_s24  ;;  %s1994_s10 = scalar_lea.hbm %s2745_s4, 6144 }
  0x79   : > { %s1989_s22 = scalar_lea.hbm %s2431_s12, 3072  ;;  %p1995_p6 = scmp.lt.u32.totalorder %s2431_s12, %s2745_s4 }
  0x7a   : > { %p1990_p8 = scmp.ne.s32.totalorder %s2431_s12, %s1989_s22  ;;  %p1996_p7 = scmp.lt.u32.totalorder %s1994_s10, %s1989_s22 }
  0x7b   : > { %p1998_p12 = scmp.lt.u32.totalorder %s1989_s22, %s2431_s12 }
  0x7c   : > { %p1992_p0 = pnand %p1990_p8, %p2378_p9  ;;  %p1997_p11 = por %p1996_p7, %p1995_p6 }
  0x7e   : > { %p1993_p4 = pneg %p1992_p0  ;;  %p1999_p5 = por %p1998_p12, %p1997_p11 }
  0x80   : > { %p2000_p10 = pnand %p1999_p5, %p1993_p4 }
  0x82   : > { %2003 = shalt.err (!%p2000_p10)
}
  0x83   : > { %s2004_s16 = scalar_lea.vmem %s2434_s11, 3072  ;;  %s2192_s29 = smov [#allocation9]  }
  0x84   : > { %p2005_p1 = scmp.ne.s32.totalorder %s2434_s11, %s2004_s16  ;;  %s2009_s0 = sshll.u32 %s2192_s29, 4  ;;  %s2010_s0 = int_to_ptr.vmem [resolvable:$false] %s2009_s0 }
  0x85   : > { %s2011_s15 = scalar_lea.vmem %s2010_s0, 6144  ;;  %p2012_p0 = scmp.lt.s32.totalorder %s2434_s11, %s2010_s0 }
  0x86   : > { %p2007_p3 = pnand %p2005_p1, %p2378_p9  ;;  %p2013_p13 = scmp.lt.s32.totalorder %s2011_s15, %s2004_s16 }
  0x88   : > { %p2008_p8 = pneg %p2007_p3  ;;  %p2014_p6 = por %p2013_p13, %p2012_p0 }
  0x8a   : > { %p2015_p7 = pnand %p2014_p6, %p2008_p8 }
  0x8c   : > { %2018 = shalt.err (!%p2015_p7)
}
  0x8d   : > { %p2746_p4 = scmp.ne.s32.totalorder %s2735_s14, 0  ;;  %s2747_s22 = smov 192  }
  0x8e   : > { %s2193_s9 = smov [#allocation11]   ;;  %s2748_s17 = sand.u32 1, %s2179_s19  }
  0x8f   : > { %1750 = dma.hbm_to_vmem [thread:$0]  (!%p2746_p4), %s2431_s12, 3072, %s2434_s11, %s2372_s25, %s2747_s22, %s2747_s22, %s2188_s23  }
  0x90   : > { %s347_s10 = sshll.u32 %s2193_s9, 4  ;;  %s1703_s24 = smul.u32 3, %s2748_s17  ;;  %s348_s10 = int_to_ptr.vmem [resolvable:$true] %s347_s10 }
  0x91   : > { %s1704_s16 = smul.u32 48, %s2183_s20  ;;  %s2019_s15 = scalar_lea.hbm %s2699_s8, 1024 }
  0x92   : > { %p2020_p13 = scmp.ne.s32.totalorder %s2699_s8, %s2019_s15  ;;  %p2026_p5 = scmp.lt.u32.totalorder %s2019_s15, %s2699_s8 }
  0x94   : > { %p2022_p11 = pnand %p2020_p13, %p2742_p2 }
  0x96   : > { %p2023_p12 = pneg %p2022_p11 }
  0x98   : > { %p2028_p10 = pnand %p2026_p5, %p2023_p12 }
  0x9a   : > { %2031 = shalt.err (!%p2028_p10)
}
  0x9b   : > { %s2032_s23 = scalar_lea.vmem %s348_s10, 1024  ;;  %p2040_p0 = scmp.lt.s32.totalorder %s348_s10, %s348_s10 }
  0x9c   : > { %p2033_p1 = scmp.ne.s32.totalorder %s348_s10, %s2032_s23  ;;  %p2041_p6 = scmp.lt.s32.totalorder %s2032_s23, %s2032_s23 }
  0x9e   : > { %p2035_p3 = pnand %p2033_p1, %p2742_p2  ;;  %p2042_p7 = por %p2041_p6, %p2040_p0 }
  0xa0   : > { %p2036_p8 = pneg %p2035_p3 }
  0xa2   : > { %p2043_p4 = pnand %p2042_p7, %p2036_p8 }
  0xa4   : > { %2046 = shalt.err (!%p2043_p4)
}
  0xa5   : > { %p2749_p13 = scmp.ne.s32.totalorder %s2734_s13, 0  ;;  %s2750_s20 = smov 4  }
  0xa6   : > { %s2751_s3 = smov 64   ;;  %s2488_s26 = scalar_lea.hbm %s2697_s6, %s1704_s16 }
  0xa7   : > { %1743 = dma.hbm_to_vmem [thread:$0]  (!%p2749_p13), %s2699_s8, 1024, %s348_s10, [#allocation7], %s2751_s3, %s2751_s3, %s2750_s20  }
  0xa8   : > { %s417_s11 = scalar_lea.vmem [#allocation10], %s1703_s24  ;;  %s2047_s13 = scalar_lea.hbm %s2488_s26, 48 }
  0xa9   : > { %s425_s22 = sshll.u32 %s417_s11, 4  ;;  %p2048_p2 = scmp.ne.s32.totalorder %s2488_s26, %s2047_s13  ;;  %s426_s22 = int_to_ptr.vmem [resolvable:$true] %s425_s22 }
  0xaa   : > { %s2052_s10 = scalar_lea.hbm %s2697_s6, 96  ;;  %p2053_p12 = scmp.lt.u32.totalorder %s2488_s26, %s2697_s6 }
  0xab   : > { %p2050_p4 = pnand %p2048_p2, %p2378_p9  ;;  %p2054_p5 = scmp.lt.u32.totalorder %s2052_s10, %s2047_s13 }
  0xac   : > { %p2056_p1 = scmp.lt.u32.totalorder %s2047_s13, %s2488_s26 }
  0xad   : > { %p2051_p11 = pneg %p2050_p4  ;;  %p2055_p10 = por %p2054_p5, %p2053_p12 }
  0xaf   : > { %p2057_p3 = por %p2056_p1, %p2055_p10 }
  0xb1   : > { %p2058_p8 = pnand %p2057_p3, %p2051_p11 }
  0xb3   : > { %2061 = shalt.err (!%p2058_p8)
}
  0xb4   : > { %s2062_s24 = scalar_lea.vmem %s426_s22, 48  ;;  %s2194_s16 = smov [#allocation10]  }
  0xb5   : > { %p2063_p0 = scmp.ne.s32.totalorder %s426_s22, %s2062_s24  ;;  %s2067_s15 = sshll.u32 %s2194_s16, 4  ;;  %s2068_s15 = int_to_ptr.vmem [resolvable:$false] %s2067_s15 }
  0xb6   : > { %s2069_s23 = scalar_lea.vmem %s2068_s15, 96  ;;  %p2070_p13 = scmp.lt.s32.totalorder %s426_s22, %s2068_s15 }
  0xb7   : > { %p2065_p6 = pnand %p2063_p0, %p2378_p9  ;;  %p2071_p2 = scmp.lt.s32.totalorder %s2069_s23, %s2062_s24 }
  0xb9   : > { %p2066_p7 = pneg %p2065_p6  ;;  %p2072_p4 = por %p2071_p2, %p2070_p13 }
  0xbb   : > { %p2073_p5 = pnand %p2072_p4, %p2066_p7 }
  0xbd   : > { %2076 = shalt.err (!%p2073_p5)
}
  0xbe   : > { %p2752_p12 = scmp.ne.s32.totalorder %s2735_s14, 0  ;;  %p2753_p11 = scmp.ne.s32.totalorder %s2733_s28, 0 }
  0xbf   : > { %p2754_p9 = scmp.eq.s32.totalorder (!%p2753_p11), %s2283_s21, 0 }
  0xc0   : > { %1753 = dma.hbm_to_vmem [thread:$0]  (!%p2752_p12), %s2488_s26, 48, %s426_s22, %s2372_s25  }
  0xc1   : > { %441 = sbr.rel (%p2753_p11) target bundleno = 1079 (0x437), region = 60 }
  0xc8   : > { %2146 = dma.done.wait (%p2754_p9), [#allocation4], 64   ;;  %p2755_p10 = pmov %p2754_p9 }
  0xc9   : > { %p2756_p1 = pmov %p2754_p9 }
  0xca   : > { %2148 = vsyncadd (%p2755_p10), [#allocation4], 4294967232 }
  0xcb   : > { %2150 = dma.done.wait (%p2756_p1), [#allocation7], 1024   ;;  %p2757_p3 = pmov %p2756_p1 }
  0xcc   : > { %s451_s14 = sand.u32 1, %s2283_s21   ;;  %s453_s25 = sand.u32 1, %s2175_s18  }
  0xcd   : > { %2152 = vsyncadd (%p2757_p3), [#allocation7], 4294966272  ;;  %s1705_s30 = smul.u32 192, %s453_s25  ;;  %s452_s28 = scalar_lea.sflag [#allocation4], %s451_s14 }
  0xce   : > { %p2758_p8 = scmp.ne.s32.totalorder %s2732_s27, 0 }
  0xcf   : > { %s2520_s20 = scalar_lea.vmem [#allocation8], %s1705_s30 }
  0xd0   : > { %2154 = dma.done.wait (%p2758_p8), %s452_s28, 6192  }
  0xd1   : > { %2156 = vsyncadd (%p2758_p8), %s452_s28, 4294961104  ;;  %s2526_s3 = smul.u32 3, %s453_s25  ;;  %s2528_s1 = scalar_lea.vmem [#allocation9], %s1705_s30 }
  0xd2   : > { %p2759_p0 = pmov %p2756_p1 }
  0xd3   : > { %s473_s4 = scalar_lea.vmem [#allocation10], %s2526_s3 }
  0xd4   : > { %2158 = dma.done.wait (%p2759_p0), [#allocation7], 1024   ;;  %p2760_p6 = pmov %p2759_p0 }
  0xd5   : > { %p529_p7 = scmp.lt.s32.totalorder %s2283_s21, 1  ;;  %p2761_p13 = scmp.ne.s32.totalorder %s2283_s21, 0 }
  0xd6   : > { %2160 = vsyncadd (%p2760_p6), [#allocation7], 4294966272  ;;  %v1813_v0 = vld [vmem:[#allocation6] sm:$0xff] (!%p2761_p13)   ;;  %v2195_v1 = vmov (!%p2761_p13), 0.0   ;;  %v1814_v2 = vld [vmem:[#allocation6 + $0x8] sm:$0xff] (!%p2761_p13)   ;;  %vm2196_vm0 = vmmov (!%p2761_p13), 0  }
  0xd7   : > { %s530_s2 = scalar_select %p529_p7, %s2283_s21, 1 }
  0xd8   : > { %541 = sbr.rel (%p2761_p13) target bundleno = 463 (0x1cf), region = 88  ;;  %1611 = vmatprep.subr.bf16.mxu0 (!%p2761_p13), %v2195_v1  ;;  %1627 = vmatprep.mubr.msk.bf16.mxu0 (!%p2761_p13), %vm2196_vm0, %v2195_v1  ;;  %v1815_v3 = vld [vmem:[#allocation6 + $0x10] sm:$0xff] (!%p2761_p13)   ;;  %v1816_v4 = vld [vmem:[#allocation6 + $0x18] sm:$0xff] (!%p2761_p13)   ;;  %v1817_v5 = vld [vmem:[#allocation6 + $0x20] sm:$0xff] (!%p2761_p13)   ;;  %s2762_s0 = sld [smem:[#allocation25_spill]] (!%p2761_p13) }
  0xd9   : > { %s1707_s12 = smul.u32 3, %s530_s2  ;;  %s1498_s26 = sshll.u32 %s530_s2, 3  ;;  %1612 = vmatpush3.bf16.msra.mxu0 (!%p2761_p13), %v1813_v0  ;;  %v1818_v6 = vld [vmem:[#allocation6 + $0x28] sm:$0xff] (!%p2761_p13)   ;;  %v1819_v7 = vld [vmem:[#allocation6 + $0x30] sm:$0xff] (!%p2761_p13)   ;;  %v1820_v8 = vld [vmem:[#allocation6 + $0x38] sm:$0xff] (!%p2761_p13)  }
  0xda   : > { %s2540_s22 = scalar_lea.vmem %s2698_s7, %s1498_s26  ;;  %1613 = vmatprep.subr.bf16.mxu0 (!%p2761_p13), %v2195_v1  ;;  %v542_v9 = vld [vmem:[#allocation3] sm:$0xf] (!%p2761_p13) }
  0xdb   : > { %s2545_s17 = scalar_lea.vmem %s2696_s5, %s1707_s12 }
  0xdd   : > { %1614 = vmatpush3.bf16.msra.mxu0 (!%p2761_p13), %v1814_v2 }
  0xde   : > { %1615 = vmatprep.subr.bf16.mxu0 (!%p2761_p13), %v2195_v1  ;;  %v1500_v10 = vld [vmem:[%s2762_s0] ss:$0 sm:$0xff] (!%p2761_p13) }
  0xe1   : > { %1616 = vmatpush3.bf16.msra.mxu0 %v1815_v3 }
  0xe2   : > { %1617 = vmatprep.subr.bf16.mxu0 %v2195_v1 }
  0xe5   : > { %1618 = vmatpush3.bf16.msra.mxu0 %v1816_v4 }
  0xe6   : > { %1619 = vmatprep.subr.bf16.mxu0 %v2195_v1 }
  0xe9   : > { %1620 = vmatpush3.bf16.msra.mxu0 %v1817_v5 }
  0xea   : > { %1621 = vmatprep.subr.bf16.mxu0 %v2195_v1 }
  0xed   : > { %1622 = vmatpush3.bf16.msra.mxu0 %v1818_v6 }
  0xee   : > { %1623 = vmatprep.subr.bf16.mxu0 %v2195_v1 }
  0xf1   : > { %1624 = vmatpush3.bf16.msra.mxu0 %v1819_v7 }
  0xf2   : > { %1625 = vmatprep.subr.bf16.mxu0 %v2195_v1 }
  0xf5   : > { %1626 = vmatpush3.bf16.msra.mxu0 %v1820_v8 }
  0xf8   : > { %1628 = vmatmul.mubr.bf16.vlgmr.msra.gmra.mrb[0].mxu0 %v542_v9 }
 0x1cb   : > { %v648_v11 = vpop.f32.mrb[0].mxu0 }
 0x1cc   : > { %v649_v12 = vadd.f32 %v1500_v10, %v648_v11  ;;  %v1629_v13 = vpop.f32.mrb[1].mxu0 }
 0x1cd   : > { %v651_v14 = vpop.f32.mrb[2].mxu0 }
 0x1ce   : > { %654 = vst [vmem:[#allocation2] sm:$0xff] %v649_v12  ;;  %v1630_v15 = vpop.f32.mrb[3].mxu0 }
 0x1cf PF: > { %v1821_v16 = vld [vmem:[%s2528_s1 + $0x4] ss:$12 sps:$4 sm:$0xff]   ;;  %v1823_v17 = vld [vmem:[%s2528_s1] ss:$12 sps:$4 sm:$0xff]   ;;  %v2197_v18 = vmov 0.0   ;;  %v2198_v19 = vmov 0   ;;  %v691_v10 = vlaneseq }
 0x1d0   : > { %1631 = vmatprep.subr.bf16.mxu1 %v2197_v18  ;;  %866 = vmatprep.mubr.bf16.mxu0 %v2198_v19  ;;  %v1824_v20 = vld [vmem:[%s2528_s1 + $0x1c] ss:$12 sps:$4 sm:$0xff]   ;;  %vm2199_vm1 = vmmov 0   ;;  %v1826_v21 = vld [vmem:[%s2528_s1 + $0x18] ss:$12 sps:$4 sm:$0xff]   ;;  %p1559_p2 = scmp.ne.s32.totalorder %s2283_s21, 1 }
 0x1d1   : > { %834 = vmatprep.subr.bf16.mxu0 %v1821_v16  ;;  %1647 = vmatprep.mubr.msk.bf16.mxu1 %vm2199_vm1, %v2197_v18  ;;  %v1827_v22 = vld [vmem:[%s2528_s1 + $0x34] ss:$12 sps:$4 sm:$0xff]   ;;  %v1829_v23 = vld [vmem:[%s2528_s1 + $0x30] ss:$12 sps:$4 sm:$0xff]   ;;  %v1830_v24 = vld [vmem:[%s2528_s1 + $0x4c] ss:$12 sps:$4 sm:$0xff]  }
 0x1d2   : > { %835 = vmatpush1.bf16.msra.mxu0 %v1823_v17  ;;  %v1842_v25 = vld [vmem:[%s2528_s1 + $0x8] ss:$12 sps:$4 sm:$0xff]   ;;  %v1833_v27 = vld [vmem:[%s2528_s1 + $0x64] ss:$12 sps:$4 sm:$0xff]   ;;  %v1846_v28 = vld [vmem:[%s2528_s1 + $0x20] ss:$12 sps:$4 sm:$0xff]  }
 0x1d3   : > { %836 = vmatprep.subr.bf16.mxu0 %v1824_v20  ;;  %v1832_v26 = vld [vmem:[%s2528_s1 + $0x48] ss:$12 sps:$4 sm:$0xff]   ;;  %1632 = vmatpush3.bf16.msra.mxu1 %v1842_v25  ;;  %v1835_v29 = vld [vmem:[%s2528_s1 + $0x60] ss:$12 sps:$4 sm:$0xff]   ;;  %v1850_v31 = vld [vmem:[%s2528_s1 + $0x38] ss:$12 sps:$4 sm:$0xff]  }
 0x1d4   : > { %1633 = vmatprep.subr.bf16.mxu1 %v2197_v18  ;;  %v1836_v30 = vld [vmem:[%s2528_s1 + $0x7c] ss:$12 sps:$4 sm:$0xff]   ;;  %v1838_v32 = vld [vmem:[%s2528_s1 + $0x78] ss:$12 sps:$4 sm:$0xff]   ;;  %v1839_v33 = vld [vmem:[%s2528_s1 + $0x94] ss:$12 sps:$4 sm:$0xff]  }
 0x1d5   : > { %v1854_v34 = vld [vmem:[%s2528_s1 + $0x50] ss:$12 sps:$4 sm:$0xff]   ;;  %v1843_v36 = vld [vmem:[%s2528_s1 + $0xac] ss:$12 sps:$4 sm:$0xff]   ;;  %v1858_v37 = vld [vmem:[%s2528_s1 + $0x68] ss:$12 sps:$4 sm:$0xff]  }
 0x1d6   : > { %837 = vmatpush1.bf16.msra.mxu0 %v1826_v21  ;;  %v1841_v35 = vld [vmem:[%s2528_s1 + $0x90] ss:$12 sps:$4 sm:$0xff]   ;;  %v1845_v38 = vld [vmem:[%s2528_s1 + $0xa8] ss:$12 sps:$4 sm:$0xff]   ;;  %v1862_v41 = vld [vmem:[%s2528_s1 + $0x80] ss:$12 sps:$4 sm:$0xff]  }
 0x1d7   : > { %838 = vmatprep.subr.bf16.mxu0 %v1827_v22  ;;  %1634 = vmatpush3.bf16.msra.mxu1 %v1846_v28  ;;  %v1849_v39 = vld [vmem:[%s2520_s20 + $0x4] ss:$12 sps:$4 sm:$0xff]   ;;  %v2582_v40 = vld [vmem:[%s2540_s22] sm:$0xff]  ;;  %v1861_v50 = vld [vmem:[%s2520_s20 + $0x4c] ss:$12 sps:$4 sm:$0xff]   ;;  %v692_v11 = vshrl.u32 %v691_v10, 7 }
 0x1d8   : > { %1635 = vmatprep.subr.bf16.mxu1 %v2197_v18  ;;  %v656_v42 = vpack.c.bf16 %v2582_v40, %v2582_v40  ;;  %v1847_v43 = vld [vmem:[%s2520_s20] ss:$12 sps:$4 sm:$0xff]   ;;  %v1853_v44 = vld [vmem:[%s2520_s20 + $0x1c] ss:$12 sps:$4 sm:$0xff]   ;;  %v1866_v45 = vld [vmem:[%s2528_s1 + $0x98] ss:$12 sps:$4 sm:$0xff]  }
 0x1d9   : > { %v1851_v46 = vld [vmem:[%s2520_s20 + $0x18] ss:$12 sps:$4 sm:$0xff]   ;;  %v1857_v47 = vld [vmem:[%s2520_s20 + $0x34] ss:$12 sps:$4 sm:$0xff]   ;;  %v1870_v48 = vld [vmem:[%s2528_s1 + $0xb0] ss:$12 sps:$4 sm:$0xff]  }
 0x1da   : > { %839 = vmatpush1.bf16.msra.mxu0 %v1829_v23  ;;  %v1855_v49 = vld [vmem:[%s2520_s20 + $0x30] ss:$12 sps:$4 sm:$0xff]   ;;  %v1874_v51 = vld [vmem:[%s2520_s20 + $0x8] ss:$12 sps:$4 sm:$0xff]   ;;  %v1878_v54 = vld [vmem:[%s2520_s20 + $0x20] ss:$12 sps:$4 sm:$0xff]  }
 0x1db   : > { %840 = vmatprep.subr.bf16.mxu0 %v1830_v24  ;;  %1636 = vmatpush3.bf16.msra.mxu1 %v1850_v31  ;;  %v1859_v52 = vld [vmem:[%s2520_s20 + $0x48] ss:$12 sps:$4 sm:$0xff]   ;;  %v1865_v53 = vld [vmem:[%s2520_s20 + $0x64] ss:$12 sps:$4 sm:$0xff]   ;;  %v1863_v55 = vld [vmem:[%s2520_s20 + $0x60] ss:$12 sps:$4 sm:$0xff]  }
 0x1dc   : > { %1637 = vmatprep.subr.bf16.mxu1 %v2197_v18  ;;  %v1869_v56 = vld [vmem:[%s2520_s20 + $0x7c] ss:$12 sps:$4 sm:$0xff]   ;;  %v1879_v57 = vld [vmem:[%s2520_s20 + $0x38] ss:$12 sps:$4 sm:$0xff]   ;;  %v1873_v59 = vld [vmem:[%s2520_s20 + $0x94] ss:$12 sps:$4 sm:$0xff]  }
 0x1dd   : > { %v1867_v58 = vld [vmem:[%s2520_s20 + $0x78] ss:$12 sps:$4 sm:$0xff]   ;;  %v1880_v60 = vld [vmem:[%s2520_s20 + $0x50] ss:$12 sps:$4 sm:$0xff]   ;;  %v1881_v63 = vld [vmem:[%s2520_s20 + $0x68] ss:$12 sps:$4 sm:$0xff]  }
 0x1de   : > { %841 = vmatpush1.bf16.msra.mxu0 %v1832_v26  ;;  %v1871_v61 = vld [vmem:[%s2520_s20 + $0x90] ss:$12 sps:$4 sm:$0xff]   ;;  %v1877_v62 = vld [vmem:[%s2520_s20 + $0xac] ss:$12 sps:$4 sm:$0xff]   ;;  %v1875_v0 = vld [vmem:[%s2520_s20 + $0xa8] ss:$12 sps:$4 sm:$0xff]  }
 0x1df   : > { %842 = vmatprep.subr.bf16.mxu0 %v1833_v27  ;;  %1638 = vmatpush3.bf16.msra.mxu1 %v1854_v34  ;;  %v915_v1 = vld [vmem:[#allocation2] sm:$0xff]  ;;  %v1882_v2 = vld [vmem:[%s2520_s20 + $0x80] ss:$12 sps:$4 sm:$0xff]   ;;  %v1884_v5 = vld [vmem:[%s2520_s20 + $0xb0] ss:$12 sps:$4 sm:$0xff]   ;;  %v693_v12 = vsub.s32 0, %v692_v11 }
 0x1e0   : > { %1639 = vmatprep.subr.bf16.mxu1 %v2197_v18  ;;  %v916_v3 = vpack.c.bf16 %v915_v1, %v915_v1  ;;  %v1883_v4 = vld [vmem:[%s2520_s20 + $0x98] ss:$12 sps:$4 sm:$0xff]   ;;  %v949_v14 = vld [vmem:[%s2545_s17] sm:$0x7]  ;;  %vm2201_vm2 = vmmov (!%p1559_p2), 0   ;;  %s2763_s15 = sld [smem:[#allocation28_spill]] (!%p1559_p2) }
 0x1e1   : > { %v689_v13 = vld [vmem:[%s473_s4] sm:$0x7]  ;;  %v954_v16 = vrot.slane %v949_v14, %v693_v12 }
 0x1e2   : > { %843 = vmatpush1.bf16.msra.mxu0 %v1835_v29  ;;  %v694_v15 = vrot.slane %v689_v13, %v693_v12 }
 0x1e3   : > { %844 = vmatprep.subr.bf16.mxu0 %v1836_v30  ;;  %1640 = vmatpush3.bf16.msra.mxu1 %v1858_v37 }
 0x1e4   : > { %1641 = vmatprep.subr.bf16.mxu1 %v2197_v18  ;;  %v1691_v17 = vadd.f32 %v954_v16, %v694_v15 }
 0x1e6   : > { %845 = vmatpush1.bf16.msra.mxu0 %v1838_v32 }
 0x1e7   : > { %846 = vmatprep.subr.bf16.mxu0 %v1839_v33  ;;  %1642 = vmatpush3.bf16.msra.mxu1 %v1862_v41 }
 0x1e8   : > { %1643 = vmatprep.subr.bf16.mxu1 %v2197_v18 }
 0x1ea   : > { %847 = vmatpush1.bf16.msra.mxu0 %v1841_v35 }
 0x1eb   : > { %848 = vmatprep.subr.bf16.mxu0 %v1843_v36  ;;  %1644 = vmatpush3.bf16.msra.mxu1 %v1866_v45  ;;  %v701_v36 = vsub.s32 2, %v692_v11 }
 0x1ec   : > { %1645 = vmatprep.subr.bf16.mxu1 %v2197_v18 }
 0x1ed   : > { %v702_v37 = vrot.slane %v689_v13, %v701_v36 }
 0x1ee   : > { %849 = vmatpush1.bf16.msra.mxu0 %v1845_v38  ;;  %v962_v38 = vrot.slane %v949_v14, %v701_v36 }
 0x1ef   : > { %1094 = vmatprep.subr.bf16.mxu0 %v1849_v39  ;;  %1646 = vmatpush3.bf16.msra.mxu1 %v1870_v48 }
 0x1f0   : > { %1651 = vmatprep.subr.bf16.mxu1 %v2197_v18 }
 0x1f1   : > { %867 = vmatmul.mubr.bf16.vlgmr.msra.gmra.mrb[0].mxu0 %v656_v42 }
 0x1f2   : > { %1095 = vmatpush1.bf16.msra.mxu0 %v1847_v43  ;;  %1126 = vmatprep.mubr.bf16.mxu0 %v2198_v19  ;;  %v697_v19 = vsub.s32 1, %v692_v11 }
 0x1f3   : > { %1096 = vmatprep.subr.bf16.mxu0 %v1853_v44  ;;  %1648 = vmatmul.mubr.bf16.vlgmr.msra.gmra.mrb[0].mxu1 %v656_v42 }
 0x1f4   : > { %1652 = vmatpush3.bf16.msra.mxu1 %v1874_v51  ;;  %1667 = vmatprep.mubr.msk.bf16.mxu1 %vm2199_vm1, %v2197_v18  ;;  %v698_v22 = vrot.slane %v689_v13, %v697_v19 }
 0x1f5   : > { %1653 = vmatprep.subr.bf16.mxu1 %v2197_v18 }
 0x1f6   : > { %1097 = vmatpush1.bf16.msra.mxu0 %v1851_v46 }
 0x1f7   : > { %1098 = vmatprep.subr.bf16.mxu0 %v1857_v47 }
 0x1f8   : > { %1654 = vmatpush3.bf16.msra.mxu1 %v1878_v54  ;;  %v1896_v54 = vld [vmem:[#allocation11 + $0x8] sm:$0xff] (!%p1559_p2)  }
 0x1f9   : > { %1655 = vmatprep.subr.bf16.mxu1 %v2197_v18 }
 0x1fa   : > { %1099 = vmatpush1.bf16.msra.mxu0 %v1855_v49 }
 0x1fb   : > { %1100 = vmatprep.subr.bf16.mxu0 %v1861_v50 }
 0x1fc   : > { %1656 = vmatpush3.bf16.msra.mxu1 %v1879_v57  ;;  %v1900_v57 = vld [vmem:[#allocation11 + $0x28] sm:$0xff] (!%p1559_p2)  }
 0x1fd   : > { %1657 = vmatprep.subr.bf16.mxu1 %v2197_v18 }
 0x1fe   : > { %1101 = vmatpush1.bf16.msra.mxu0 %v1859_v52  ;;  %v1895_v52 = vld [vmem:[#allocation11] sm:$0xff] (!%p1559_p2)  }
 0x1ff   : > { %1102 = vmatprep.subr.bf16.mxu0 %v1865_v53  ;;  %v2200_v53 = vmov (!%p1559_p2), 0.0  }
 0x200   : > { %1658 = vmatpush3.bf16.msra.mxu1 %v1880_v60 }
 0x201   : > { %1659 = vmatprep.subr.bf16.mxu1 %v2197_v18 }
 0x202   : > { %1103 = vmatpush1.bf16.msra.mxu0 %v1863_v55  ;;  %v1897_v55 = vld [vmem:[#allocation11 + $0x10] sm:$0xff] (!%p1559_p2)  }
 0x203   : > { %1104 = vmatprep.subr.bf16.mxu0 %v1869_v56  ;;  %v1899_v56 = vld [vmem:[#allocation11 + $0x20] sm:$0xff] (!%p1559_p2)  }
 0x204   : > { %1660 = vmatpush3.bf16.msra.mxu1 %v1881_v63 }
 0x205   : > { %1661 = vmatprep.subr.bf16.mxu1 %v2197_v18 }
 0x206   : > { %1105 = vmatpush1.bf16.msra.mxu0 %v1867_v58  ;;  %v1901_v58 = vld [vmem:[#allocation11 + $0x30] sm:$0xff] (!%p1559_p2)  }
 0x207   : > { %1106 = vmatprep.subr.bf16.mxu0 %v1873_v59  ;;  %v1902_v59 = vld [vmem:[#allocation11 + $0x38] sm:$0xff] (!%p1559_p2)  }
 0x208   : > { %1662 = vmatpush3.bf16.msra.mxu1 %v1882_v2 }
 0x209   : > { %1663 = vmatprep.subr.bf16.mxu1 %v2197_v18 }
 0x20a   : > { %1107 = vmatpush1.bf16.msra.mxu0 %v1871_v61  ;;  %v1560_v61 = vld [vmem:[%s2763_s15] ss:$0 sm:$0xff] (!%p1559_p2) }
 0x20b   : > { %1108 = vmatprep.subr.bf16.mxu0 %v1877_v62 }
 0x20c   : > { %1664 = vmatpush3.bf16.msra.mxu1 %v1883_v4 }
 0x20d   : > { %1665 = vmatprep.subr.bf16.mxu1 %v2197_v18  ;;  %v958_v18 = vrot.slane %v949_v14, %v697_v19 }
 0x20e   : > { %1109 = vmatpush1.bf16.msra.mxu0 %v1875_v0 }
 0x20f   : > { %v1693_v27 = vadd.f32 %v958_v18, %v698_v22  ;;  %1671 = vmatprep.subr.bf16.mxu0 (!%p1559_p2), %v2200_v53 }
 0x210   : > { %1666 = vmatpush3.bf16.msra.mxu1 %v1884_v5 }
 0x211   : > { %1127 = vmatmul.mubr.bf16.vlgmr.msra.gmra.mrb[0].mxu0 %v916_v3 }
 0x212   : > { %1672 = vmatpush3.bf16.msra.mxu0 (!%p1559_p2), %v1895_v52  ;;  %1687 = vmatprep.mubr.msk.bf16.mxu0 (!%p1559_p2), %vm2201_vm2, %v2200_v53 }
 0x213   : > { %1668 = vmatmul.mubr.bf16.vlgmr.msra.gmra.mrb[4].mxu1 %v916_v3  ;;  %1673 = vmatprep.subr.bf16.mxu0 (!%p1559_p2), %v2200_v53 }
 0x216   : > { %1674 = vmatpush3.bf16.msra.mxu0 (!%p1559_p2), %v1896_v54 }
 0x217   : > { %1675 = vmatprep.subr.bf16.mxu0 (!%p1559_p2), %v2200_v53 }
 0x21a   : > { %1676 = vmatpush3.bf16.msra.mxu0 (!%p1559_p2), %v1897_v55 }
 0x21b   : > { %1677 = vmatprep.subr.bf16.mxu0 (!%p1559_p2), %v2200_v53 }
 0x2c6   : > { %v909_v6 = vpop.f32.mrb[0].mxu1 }
 0x2c7   : > { %v1649_v7 = vpop.f32.mrb[1].mxu1  ;;  %v910_v41 = vadd.f32 %v909_v6, %v702_v37 }
 0x2c8   : > { %v912_v8 = vpop.f32.mrb[2].mxu1 }
 0x2c9   : > { %v1650_v9 = vpop.f32.mrb[3].mxu1 }
 0x2e4   : > { %v1128_v20 = vpop.f32.mrb[0].mxu0 }
 0x2e5   : > { %v1692_v21 = vadd.f32 %v1691_v17, %v1128_v20  ;;  %v1130_v23 = vpop.f32.mrb[1].mxu0 }
 0x2e6   : > { %v1132_v24 = vpop.f32.mrb[2].mxu0  ;;  %v1694_v28 = vadd.f32 %v1693_v27, %v1130_v23  ;;  %v1169_v29 = vpop.f32.mrb[4].mxu1 }
 0x2e7   : > { %v1557_v25 = vmul.f32 -1.442695, %v1692_v21  ;;  %v1133_v26 = vpop.f32.mrb[3].mxu0  ;;  %v1669_v30 = vpop.f32.mrb[5].mxu1  ;;  %v1170_v42 = vadd.f32 %v1169_v29, %v962_v38 }
 0x2e8   : > { %v1172_v31 = vpop.f32.mrb[6].mxu1  ;;  %v1558_v33 = vmul.f32 -1.442695, %v1694_v28 }
 0x2e9   : > { %1885 = vpow2.f32 %v1557_v25  ;;  %v1670_v32 = vpop.f32.mrb[7].mxu1 }
 0x2ea   : > { %1887 = vpow2.f32 %v1558_v33 }
 0x2f3   : > { %v1886_v34 = vpop.eup %1885 }
 0x2f4   : > { %v1179_v35 = vadd.f32 1.0, %v1886_v34  ;;  %v1888_v39 = vpop.eup %1887 }
 0x2f5   : > { %v1186_v45 = vadd.f32 1.0, %v1888_v39 }
 0x2f6   : > { %1889 = vrcp.f32 %v1179_v35 }
 0x300   : > { %v1890_v43 = vpop.eup %1889 }
 0x301   : > { %v1189_v44 = vmul.f32 %v1890_v43, %v910_v41 }
 0x303   : > { %v1190_v46 = vadd.f32 %v1189_v44, %v1170_v42 }
 0x305   : > { %1891 = vtanh.f32 %v1190_v46 }
 0x306   : > { %1893 = vrcp.f32 %v1186_v45 }
 0x30f   : > { %v1892_v47 = vpop.eup %1891 }
 0x310   : > { %v1192_v48 = vsub.f32 %v2582_v40, %v1892_v47  ;;  %v1894_v49 = vpop.eup %1893  ;;  %1199 = sbr.rel (%p1559_p2) target bundleno = 1019 (0x3fb), region = 92  ;;  %v1898_v40 = vld [vmem:[#allocation11 + $0x18] sm:$0xff] (!%p1559_p2)  }
 0x311   : > { %1678 = vmatpush3.bf16.msra.mxu0 (!%p1559_p2), %v1898_v40 }
 0x312   : > { %v1193_v50 = vmul.f32 %v1894_v49, %v1192_v48  ;;  %1679 = vmatprep.subr.bf16.mxu0 (!%p1559_p2), %v2200_v53 }
 0x314   : > { %v1194_v51 = vadd.f32 %v1892_v47, %v1193_v50 }
 0x315   : > { %1680 = vmatpush3.bf16.msra.mxu0 (!%p1559_p2), %v1899_v56 }
 0x316   : > { %1195 = vst [vmem:[#allocation2] sm:$0xff] %v1194_v51  ;;  %1313 = vst [vmem:[#allocation13] sm:$0xff] (!%p1559_p2), %v1194_v51  ;;  %1681 = vmatprep.subr.bf16.mxu0 (!%p1559_p2), %v2200_v53  ;;  %v1200_v60 = vpack.c.bf16 (!%p1559_p2), %v1194_v51, %v1194_v51 }
 0x319   : > { %1682 = vmatpush3.bf16.msra.mxu0 %v1900_v57 }
 0x31a   : > { %1683 = vmatprep.subr.bf16.mxu0 %v2200_v53 }
 0x31d   : > { %1684 = vmatpush3.bf16.msra.mxu0 %v1901_v58 }
 0x31e   : > { %1685 = vmatprep.subr.bf16.mxu0 %v2200_v53 }
 0x321   : > { %1686 = vmatpush3.bf16.msra.mxu0 %v1902_v59 }
 0x324   : > { %1688 = vmatmul.mubr.bf16.vlgmr.msra.gmra.mrb[0].mxu0 %v1200_v60 }
 0x3f7   : > { %v1306_v62 = vpop.f32.mrb[0].mxu0 }
 0x3f8   : > { %v1307_v63 = vadd.f32 %v1560_v61, %v1306_v62  ;;  %v1689_v0 = vpop.f32.mrb[1].mxu0 }
 0x3f9   : > { %v1309_v1 = vpop.f32.mrb[2].mxu0 }
 0x3fa   : > { %1312 = vst [vmem:[#allocation12] sm:$0xff] %v1307_v63  ;;  %v1690_v2 = vpop.f32.mrb[3].mxu0 }
 0x3fb PF: > { %p1761_p4 = scmp.eq.s32.totalorder %s2283_s21, 1  ;;  %s2202_s23 = smov [#allocation12]  }
 0x3fc   : > { %s1321_s14 = sshll.u32 %s2202_s23, 4  ;;  %s2203_s25 = smov [#allocation13]   ;;  %s1322_s14 = int_to_ptr.vmem [resolvable:$true] %s1321_s14 }
 0x3fd   : > { %s1332_s30 = sshll.u32 %s2203_s25, 4  ;;  %s2077_s28 = scalar_lea.vmem %s1322_s14, 128  ;;  %s1333_s30 = int_to_ptr.vmem [resolvable:$true] %s1332_s30 }
 0x3fe   : > { %p2078_p5 = scmp.ne.s32.totalorder %s1322_s14, %s2077_s28  ;;  %p2084_p9 = scmp.lt.s32.totalorder %s1322_s14, %s1322_s14 }
 0x3ff   : > { %p2085_p10 = scmp.lt.s32.totalorder %s2077_s28, %s2077_s28 }
 0x400   : > { %p2079_p12 = pnand %p2078_p5, %p1761_p4 }
 0x401   : > { %p2086_p1 = por %p2085_p10, %p2084_p9 }
 0x402   : > { %p2080_p11 = pneg %p2079_p12 }
 0x404   : > { %p2087_p3 = pnand %p2086_p1, %p2080_p11 }
 0x406   : > { %2090 = shalt.err (!%p2087_p3)
}
 0x407   : > { %s2764_s1 = sld [smem:[#allocation29_spill]] }
 0x40d   : > { %s2091_s4 = scalar_lea.hbm %s2764_s1, 128 }
 0x40e   : > { %p2092_p8 = scmp.ne.s32.totalorder %s2764_s1, %s2091_s4  ;;  %p2097_p7 = scmp.lt.u32.totalorder %s2091_s4, %s2764_s1 }
 0x410   : > { %p2093_p0 = pnand %p2092_p8, %p1761_p4 }
 0x412   : > { %p2094_p6 = pneg %p2093_p0 }
 0x414   : > { %p2099_p13 = pnand %p2097_p7, %p2094_p6 }
 0x416   : > { %2102 = shalt.err (!%p2099_p13)
}
 0x417   : > { %1727 = dma.vmem_to_hbm [thread:$0]  (%p1761_p4), %s1322_s14, 128, %s2764_s1, [#allocation5]  }
 0x418   : > { %s2103_s13 = scalar_lea.vmem %s1333_s30, 128  ;;  %p2110_p11 = scmp.lt.s32.totalorder %s1333_s30, %s1333_s30 }
 0x419   : > { %p2104_p2 = scmp.ne.s32.totalorder %s1333_s30, %s2103_s13  ;;  %p2111_p9 = scmp.lt.s32.totalorder %s2103_s13, %s2103_s13 }
 0x41b   : > { %p2105_p5 = pnand %p2104_p2, %p1761_p4  ;;  %p2112_p10 = por %p2111_p9, %p2110_p11 }
 0x41d   : > { %p2106_p12 = pneg %p2105_p5 }
 0x41f   : > { %p2113_p1 = pnand %p2112_p10, %p2106_p12 }
 0x421   : > { %2116 = shalt.err (!%p2113_p1)
}
 0x422   : > { %s2765_s10 = sld [smem:[#allocation30_spill]] }
 0x428   : > { %s2117_s29 = scalar_lea.hbm %s2765_s10, 128 }
 0x429   : > { %p2118_p3 = scmp.ne.s32.totalorder %s2765_s10, %s2117_s29  ;;  %p2123_p6 = scmp.lt.u32.totalorder %s2117_s29, %s2765_s10 }
 0x42b   : > { %p2119_p8 = pnand %p2118_p3, %p1761_p4 }
 0x42d   : > { %p2120_p0 = pneg %p2119_p8 }
 0x42f   : > { %p2125_p7 = pnand %p2123_p6, %p2120_p0 }
 0x431   : > { %2128 = shalt.err (!%p2125_p7)
}
 0x432   : > { %1729 = dma.vmem_to_hbm [thread:$0]  (%p1761_p4), %s1333_s30, 128, %s2765_s10, [#allocation14]  }
 0x433   : > { %2162 = dma.done.wait (%p1761_p4), [#allocation5], 128  }
 0x434   : > { %2164 = vsyncadd (%p1761_p4), [#allocation5], 4294967168 }
 0x435   : > { %2166 = dma.done.wait (%p1761_p4), [#allocation14], 128  }
 0x436   : > { %2168 = vsyncadd (%p1761_p4), [#allocation14], 4294967168 }
 0x437 PF: > { %s2766_s20 = sld [smem:[#allocation21_spill]]  ;;  %s2767_s25 = sld [smem:[#allocation22_spill]] }
 0x438   : > { %s2768_s17 = smov %s2175_s18  ;;  %s2769_s18 = smov %s2179_s19 }
 0x43d   : > { %p23_p13 = scmp.ge.s32.totalorder %s2766_s20, 4   ;;  %s2770_s19 = smov %s2767_s25 }
 0x43f   :  { %25 = sbr.rel (!%p23_p13) target bundleno = 14 (0xe), region = 152 }
 0x446   :  { %1349 = vsyncpa [#allocation4], 1 }
 0x447   :  { %1351 = vsyncpa [#allocation4 + $0x1], 1 }
 0x448   :  { %1352 = vsyncpa [#allocation7], 1 }
 0x449   :  { %1353 = vsyncpa [#allocation5], 1 }
 0x44a   :  { %1355 = vsyncpa [#allocation5 + $0x1], 1 }
 0x44b   :  { %1356 = vsyncpa [#allocation14], 1 }

</bundles_post_ra>
